<compile_context>
chip_gen: v7x
topology: tpu7x:2x2x1
jax: 0.10.0
libtpu: 0.0.40
codegen_flags: <defaults>
</compile_context>

<pallas_src>
import math

import jax
import jax.numpy as jnp
from jax.experimental import pallas as pl
from jax.experimental.pallas import tpu as pltpu

_LANES = 128


# ----------------------------------------------------------------------------
# Table construction (mirrors RoPE.__init__) — build once, reuse every forward.
# ----------------------------------------------------------------------------
def make_rotations(channel_dims, feature_dim, base=10000.0):
    """Returns cos/sin tables of shape (*channel_dims, C//2)."""
    assert feature_dim % (2 * len(channel_dims)) == 0
    k_max = feature_dim // (2 * len(channel_dims))
    theta_ks = 1.0 / (base ** (jnp.arange(k_max, dtype=jnp.float32) / k_max))
    grids = jnp.meshgrid(
        *[jnp.arange(d, dtype=jnp.float32) for d in channel_dims], indexing="ij"
    )
    angles = jnp.concatenate([g[..., None] * theta_ks for g in grids], axis=-1)
    return jnp.cos(angles), jnp.sin(angles)


def make_rope_tables(channel_dims, feature_dim, base=10000.0):
    """One-time build of the interleaved, sign-baked rotation tables (N,) f32."""
    cos, sin = make_rotations(channel_dims, feature_dim, base)
    n_half = cos.size
    cos2 = jnp.repeat(cos.reshape(-1).astype(jnp.float32), 2)            # (N,)
    sign = jnp.tile(jnp.array([-1.0, 1.0], dtype=jnp.float32), n_half)
    sin2 = jnp.repeat(sin.reshape(-1).astype(jnp.float32), 2) * sign     # (N,)
    return cos2, sin2


# ----------------------------------------------------------------------------
# Kernel
# ----------------------------------------------------------------------------
def _rope_kernel(x_ref, cos2_ref, sin2_ref, o_ref):
    # x_ref: (row_tile, L) slab of the flattened, pair-interleaved input.
    x = x_ref[...].astype(jnp.float32)
    c = cos2_ref[...]
    s = sin2_ref[...]
    L = x.shape[-1]
    # pair_swap: even lane i gets x[i+1], odd lane i gets x[i-1]
    # (pairs never straddle a row boundary since L is even; the wrap-around
    #  lanes only land on the unused branch of the select).
    x_next = pltpu.roll(x, L - 1, 1)   # x_next[:, i] = x[:, (i+1) % L]
    x_prev = pltpu.roll(x, 1, 1)       # x_prev[:, i] = x[:, (i-1) % L]
    # Parity mask built from a single (1, L) iota, broadcast by the select —
    # keeps per-element VPU work to ~4 ops/elem (select + 2 mul + add).
    parity_even = (jax.lax.broadcasted_iota(jnp.int32, (1, L), 1) & 1) == 0
    swapped = jnp.where(parity_even, x_next, x_prev)
    o_ref[...] = (x * c + swapped * s).astype(o_ref.dtype)


# ----------------------------------------------------------------------------
# Tiling helpers
# ----------------------------------------------------------------------------
def _hw_row_tile_cap():
    """Per-generation cap on the row tile (rows of 128 f32 lanes)."""
    cap = 2048  # 1 MiB f32 block: safe default on every generation
    try:
        info = pltpu.get_tpu_info()
        vmem = getattr(info, "vmem_capacity_bytes", None)
        if vmem is not None:
            if int(vmem) >= (100 << 20):   # v5e / v6e: 128 MiB physical VMEM
                cap = 8192                 # 4 MiB blocks
            else:                           # v7x: 64 MiB per TensorCore
                cap = 4096                 # 2 MiB blocks
    except Exception:
        pass
    return cap


def _pick_row_tile(rows, cap):
    """Returns (row_tile, rows_padded).

    row_tile is always a multiple of 8; rows_padded is a multiple of row_tile
    (== rows when no padding is needed)."""
    cap = max(8, cap - cap % 8)
    if rows <= cap:
        rows_pad = rows + (-rows) % 8
        return rows_pad, rows_pad          # single grid step
    t = cap
    while t >= 8:
        if rows % t == 0:
            return t, rows                  # exact multiple-of-8 divisor
        t -= 8
    rows_pad = rows + (-rows) % cap         # awkward rows: pad up to the cap
    return cap, rows_pad


# ----------------------------------------------------------------------------
# Forward
# ----------------------------------------------------------------------------
def rope_forward(x, cos2, sin2, out_dtype=jnp.float32):
    """x: (B, *spatial, C); cos2/sin2: (prod(spatial)*C,) interleaved tables.

    Returns an array with x's shape in `out_dtype` (default float32, matching
    the PyTorch module's unconditional float32 cast)."""
    B = x.shape[0]
    inner = x.shape[1:]
    N = math.prod(inner)
    assert N % 2 == 0
    assert cos2.shape == (N,) and sin2.shape == (N,)

    L = _LANES
    rows = -(-N // L)
    cap = _hw_row_tile_cap()
    row_tile, rows_pad = _pick_row_tile(rows, cap)
    N_pad = rows_pad * L
    num_tiles = rows_pad // row_tile

    xf = x.reshape(B, N)               # contiguous row-major reshape: free
    c2, s2 = cos2, sin2
    if N_pad != N:
        # Fallback for awkward shapes (one extra HBM copy of x, sliced off below).
        xf = jnp.pad(xf, ((0, 0), (0, N_pad - N)))
        c2 = jnp.pad(c2, (0, N_pad - N), constant_values=1.0)
        s2 = jnp.pad(s2, (0, N_pad - N))
    xf = xf.reshape(B, rows_pad, L)
    c2 = c2.reshape(rows_pad, L)
    s2 = s2.reshape(rows_pad, L)

    out_dtype = jnp.dtype(out_dtype)
    blk_elems = row_tile * L
    # 4 streams (x, out, cos2, sin2), double-buffered, plus headroom.
    vmem_need = 2 * blk_elems * (x.dtype.itemsize + out_dtype.itemsize + 8)
    vmem_limit = int(min(max(vmem_need + (8 << 20), 16 << 20), 40 << 20))

    bytes_accessed = int(
        B * N_pad * x.dtype.itemsize       # read x (native dtype)
        + B * N_pad * out_dtype.itemsize   # write out
        + 2 * N_pad * 4                    # rotation tables (read once)
    )

    out = pl.pallas_call(
        _rope_kernel,
        out_shape=jax.ShapeDtypeStruct((B, rows_pad, L), out_dtype),
        grid_spec=pltpu.PrefetchScalarGridSpec(
            num_scalar_prefetch=0,
            # batch axis innermost so the cos/sin blocks stay resident across B
            grid=(num_tiles, B),
            in_specs=[
                pl.BlockSpec((None, row_tile, L), lambda t, b: (b, t, 0)),
                pl.BlockSpec((row_tile, L), lambda t, b: (t, 0)),
                pl.BlockSpec((row_tile, L), lambda t, b: (t, 0)),
            ],
            out_specs=pl.BlockSpec((None, row_tile, L), lambda t, b: (b, t, 0)),
        ),
        compiler_params=pltpu.CompilerParams(
            dimension_semantics=("parallel", "parallel"),
            vmem_limit_bytes=vmem_limit,
        ),
        cost_estimate=pl.CostEstimate(
            flops=4 * B * N_pad, transcendentals=0, bytes_accessed=bytes_accessed
        ),
    )(xf, c2, s2)

    out = out.reshape(B, N_pad)
    if N_pad != N:
        out = out[:, :N]
    return out.reshape(x.shape)


# ----------------------------------------------------------------------------
# Pure-JAX reference of the PyTorch forward (complex rotation)
# ----------------------------------------------------------------------------
def rope_reference(x, cos, sin):
    B, H, W, C = x.shape
    x = x.astype(jnp.float32)
    xc = x.reshape(B, H, W, C // 2, 2)
    xr, xi = xc[..., 0], xc[..., 1]
    out_re = cos * xr - sin * xi
    out_im = cos * xi + sin * xr
    return jnp.stack([out_re, out_im], axis=-1).reshape(B, H, W, C)


if __name__ == "__main__":
    # Module constructed as RoPE(shape=(H, W, C)); forward input x: (B, H, W, C).
    B, H, W, C = 2, 8, 8, 32

    cos, sin = make_rotations((H, W), C, base=10000.0)
    cos2, sin2 = make_rope_tables((H, W), C, base=10000.0)   # built once at init

    key = jax.random.PRNGKey(0)
    x = jax.random.normal(key, (B, H, W, C), dtype=jnp.float32)

    out = jax.block_until_ready(rope_forward(x, cos2, sin2))

    ref = rope_reference(x, cos, sin)
    assert out.shape == (B, H, W, C)
    assert out.dtype == jnp.float32
    assert jnp.allclose(out, ref, atol=1e-5, rtol=1e-5)

    print("KERNEL_OK")
</pallas_src>

<mosaic_0001>
module attributes {stable_mosaic.version = 11 : i64} {
  func.func @_rope_kernel(%arg0: i32, %arg1: i32, %arg2: memref<1x16x128xf32, #tpu.memory_space<vmem>>, %arg3: memref<16x128xf32, #tpu.memory_space<vmem>>, %arg4: memref<16x128xf32, #tpu.memory_space<vmem>>, %arg5: memref<1x16x128xf32, #tpu.memory_space<vmem>>) attributes {dimension_semantics = [#tpu.dimension_semantics<parallel>, #tpu.dimension_semantics<parallel>], iteration_bounds = array<i64: 1, 2>, scalar_prefetch = 0 : i64, scratch_operands = 0 : i64, tpu.core_type = #tpu.core_type<tc>, window_params = [{transform_indices = @transform_0, window_bounds = array<i64: 1, 16, 128>}, {transform_indices = @transform_1, window_bounds = array<i64: 16, 128>}, {transform_indices = @transform_2, window_bounds = array<i64: 16, 128>}, {transform_indices = @transform_3, window_bounds = array<i64: 1, 16, 128>}]} {
    %c0 = arith.constant 0 : index
    %c0_0 = arith.constant 0 : index
    %c0_1 = arith.constant 0 : index
    %0 = vector.load %arg2[%c0, %c0_0, %c0_1] : memref<1x16x128xf32, #tpu.memory_space<vmem>>, vector<1x16x128xf32>
    %1 = vector.shape_cast %0 : vector<1x16x128xf32> to vector<16x128xf32>
    %c0_2 = arith.constant 0 : index
    %c0_3 = arith.constant 0 : index
    %2 = vector.load %arg3[%c0_2, %c0_3] : memref<16x128xf32, #tpu.memory_space<vmem>>, vector<16x128xf32>
    %c0_4 = arith.constant 0 : index
    %c0_5 = arith.constant 0 : index
    %3 = vector.load %arg4[%c0_4, %c0_5] : memref<16x128xf32, #tpu.memory_space<vmem>>, vector<16x128xf32>
    %c127_i32 = arith.constant 127 : i32
    %4 = tpu.dynamic_rotate %1 by %c127_i32 dim 1 : vector<16x128xf32>, i32 -> vector<16x128xf32>
    %c1_i32 = arith.constant 1 : i32
    %5 = tpu.dynamic_rotate %1 by %c1_i32 dim 1 : vector<16x128xf32>, i32 -> vector<16x128xf32>
    %6 = tpu.iota {dimensions = array<i32: 1>} : vector<1x128xi32>
    %c1_i32_6 = arith.constant 1 : i32
    %7 = vector.broadcast %c1_i32_6 : i32 to vector<1x128xi32>
    %8 = arith.andi %6, %7 : vector<1x128xi32>
    %c0_i32 = arith.constant 0 : i32
    %9 = vector.broadcast %c0_i32 : i32 to vector<1x128xi32>
    %10 = arith.cmpi eq, %8, %9 : vector<1x128xi32>
    %11 = vector.shape_cast %10 : vector<1x128xi1> to vector<1x128xi1>
    %12 = vector.broadcast %11 : vector<1x128xi1> to vector<16x128xi1>
    %13 = arith.select %12, %4, %5 : vector<16x128xi1>, vector<16x128xf32>
    %14 = arith.mulf %1, %2 : vector<16x128xf32>
    %15 = arith.mulf %13, %3 : vector<16x128xf32>
    %16 = arith.addf %14, %15 : vector<16x128xf32>
    %c0_7 = arith.constant 0 : index
    %c0_8 = arith.constant 0 : index
    %c0_9 = arith.constant 0 : index
    %17 = vector.load %arg5[%c0_7, %c0_8, %c0_9] : memref<1x16x128xf32, #tpu.memory_space<vmem>>, vector<1x16x128xf32>
    %18 = vector.shape_cast %17 : vector<1x16x128xf32> to vector<16x128xf32>
    %19 = vector.shape_cast %16 : vector<16x128xf32> to vector<1x16x128xf32>
    tpu.vector_store %arg5[%c0_7, %c0_8, %c0_9], %19 {strides = array<i32>} : memref<1x16x128xf32, #tpu.memory_space<vmem>>, vector<1x16x128xf32>,
    return
  }
  func.func @transform_0(%arg0: i32, %arg1: i32) -> (i32, i32, i32) {
    %c0_i32 = arith.constant 0 : i32
    %c0_i32_0 = arith.constant 0 : i32
    return %arg1, %arg0, %c0_i32 : i32, i32, i32
  }
  func.func @transform_1(%arg0: i32, %arg1: i32) -> (i32, i32) {
    %c0_i32 = arith.constant 0 : i32
    %c0_i32_0 = arith.constant 0 : i32
    return %arg0, %c0_i32 : i32, i32
  }
  func.func @transform_2(%arg0: i32, %arg1: i32) -> (i32, i32) {
    %c0_i32 = arith.constant 0 : i32
    %c0_i32_0 = arith.constant 0 : i32
    return %arg0, %c0_i32 : i32, i32
  }
  func.func @transform_3(%arg0: i32, %arg1: i32) -> (i32, i32, i32) {
    %c0_i32 = arith.constant 0 : i32
    %c0_i32_0 = arith.constant 0 : i32
    return %arg1, %arg0, %c0_i32 : i32, i32, i32
  }
}

</mosaic_0001>

<bundles_post_ra>
// kernel: tpu_custom_call.1
= control target key start
LH: loop header
LB: loop body
LE: loop exit
PB: predicated region body
PF: predicated region fallthrough
CT: control target
= control target key end

     0   :  { %8 = vsyncpa [#allocation3], 0  ;;  %s998_s0 = inlined_call_operand.hbm [shape: f32[2,16,128], index: 0, kind: input, shape index: {}]   ;;  %s999_s1 = inlined_call_operand.hbm [shape: f32[16,128], index: 1, kind: input, shape index: {}]   ;;  %s1000_s2 = inlined_call_operand.hbm [shape: f32[16,128], index: 2, kind: input, shape index: {}]   ;;  %s1001_s3 = inlined_call_operand.hbm [shape: f32[2,16,128], index: 3, kind: output, shape index: {}]  }
   0x1   :  { %10 = vsyncpa [#allocation3 + $0x1], 0 }
   0x2   :  { %11 = vsyncpa [#allocation6], 0 }
   0x3   :  { %12 = vsyncpa [#allocation4], 0 }
   0x4   :  { %14 = vsyncpa [#allocation4 + $0x1], 0  ;;  %s726_s12 = smov 0   ;;  %s728_s13 = smov 0  }
   0x5   :  { %s730_s14 = smov 0   ;;  %s732_s15 = smov 0  }
   0x6   :  { %s734_s16 = smov 0   ;;  %s736_s17 = smov 0  }
   0x7 LB: > { %s412_s18 = sadd.s32 4294967295, %s694_s17   ;;  %s413_s19 = sadd.s32 4294967294, %s694_s17   ;;  %s694_s17 = sphi %s736_s17, %s20_s17   ;;  %s690_s16 = sphi %s734_s16, %s1025_s16   ;;  %s686_s15 = sphi %s732_s15, %s1024_s15   ;;  %s682_s14 = sphi %s730_s14, %s1023_s14   ;;  %s678_s13 = sphi %s728_s13, %s1022_s13   ;;  %s674_s12 = sphi %s726_s12, %s1021_s12  }
   0x8   : > { %p54_p0 = scmp.ne.s32.totalorder %s678_s13, %s674_s12  ;;  %p760_p1 = scmp.eq.s32.totalorder %s412_s18, 0 }
   0x9   : > { %p764_p2 = scmp.eq.s32.totalorder %s412_s18, 1  ;;  %p138_p3 = scmp.eq.s32.totalorder %s413_s19, 1 }
   0xa   : > { %s1006_s20 = scalar_select %p760_p1, 1, 0 }
   0xb   : > { %p770_p4 = por %p760_p1, %p54_p0  ;;  %p414_p5 = scmp.ge.s32.totalorder %s694_s17, 1 }
   0xc   : > { %p775_p6 = por %p138_p3, %p54_p0  ;;  %p145_p7 = scmp.lt.s32.totalorder %s694_s17, 3 }
   0xd   : > { %s1008_s22 = scalar_select %p770_p4, 1, 0 }
   0xe   : > { %s1009_s23 = scalar_select %p775_p6, 1, 0 }
   0xf   : > { %p780_p8 = pnand %p414_p5, %p145_p7  ;;  %s696_s25 = smov [#allocation5]  }
  0x10   : > { %s160_s26 = sshll.u32 %s696_s25, 4  ;;  %s697_s28 = smov [#allocation7]   ;;  %s784_s26 = int_to_ptr.vmem [resolvable:$true] %s160_s26 }
  0x11   : > { %p445_p9 = pneg %p780_p8  ;;  %s176_s29 = sshll.u32 %s697_s28, 4  ;;  %s795_s29 = int_to_ptr.vmem [resolvable:$true] %s176_s29 }
  0x12   : > { %s522_s5 = scalar_lea.hbm %s999_s1, 256 }
  0x13   : > { %p791_p11 = pnand %p445_p9, %p760_p1  ;;  %p523_p12 = scmp.ne.s32.totalorder %s999_s1, %s522_s5 }
  0x14   : > { %p529_p5 = scmp.lt.u32.totalorder %s522_s5, %s999_s1 }
  0x15   : > { %p524_p13 = pneg %p791_p11 }
  0x17   : > { %p525_p0 = pnand %p524_p13, %p523_p12 }
  0x19   : > { %p526_p3 = pneg %p525_p0 }
  0x1b   : > { %p531_p7 = pnand %p529_p5, %p526_p3 }
  0x1d   : > { %534 = shalt.err (!%p531_p7)
}
  0x1e   : > { %s535_s10 = scalar_lea.vmem %s784_s26, 256  ;;  %p543_p1 = scmp.lt.s32.totalorder %s784_s26, %s784_s26 }
  0x1f   : > { %p536_p9 = scmp.ne.s32.totalorder %s784_s26, %s535_s10  ;;  %p544_p12 = scmp.lt.s32.totalorder %s535_s10, %s535_s10 }
  0x21   : > { %p538_p10 = pnand %p536_p9, %p524_p13  ;;  %p545_p0 = por %p544_p12, %p543_p1 }
  0x23   : > { %p539_p6 = pneg %p538_p10 }
  0x25   : > { %p546_p4 = pnand %p545_p0, %p539_p6 }
  0x27   : > { %549 = shalt.err (!%p546_p4)
}
  0x28   : > { %s698_s11 = smov 128   ;;  %s699_s18 = smov 8  }
  0x29   : > { %448 = dma.hbm_to_vmem [thread:$0]  (!%p791_p11), %s999_s1, 256, %s784_s26, [#allocation6], %s698_s11, %s698_s11, %s699_s18  }
  0x2a   : > { %s550_s4 = scalar_lea.hbm %s1000_s2, 256 }
  0x2b   : > { %p551_p1 = scmp.ne.s32.totalorder %s1000_s2, %s550_s4  ;;  %p557_p10 = scmp.lt.u32.totalorder %s550_s4, %s1000_s2 }
  0x2d   : > { %p553_p4 = pnand %p551_p1, %p524_p13 }
  0x2f   : > { %p554_p6 = pneg %p553_p4 }
  0x31   : > { %p559_p3 = pnand %p557_p10, %p554_p6 }
  0x33   : > { %562 = shalt.err (!%p559_p3)
}
  0x34   : > { %s563_s26 = scalar_lea.vmem %s795_s29, 256  ;;  %p571_p12 = scmp.lt.s32.totalorder %s795_s29, %s795_s29 }
  0x35   : > { %p564_p5 = scmp.ne.s32.totalorder %s795_s29, %s563_s26  ;;  %p572_p0 = scmp.lt.s32.totalorder %s563_s26, %s563_s26 }
  0x37   : > { %p566_p7 = pnand %p564_p5, %p524_p13  ;;  %p573_p1 = por %p572_p0, %p571_p12 }
  0x39   : > { %p567_p9 = pneg %p566_p7 }
  0x3b   : > { %p574_p4 = pnand %p573_p1, %p567_p9 }
  0x3d   : > { %577 = shalt.err (!%p574_p4)
}
  0x3e   : > { %451 = dma.hbm_to_vmem [thread:$0]  (!%p791_p11), %s1000_s2, 256, %s795_s29, [#allocation6], %s698_s11, %s698_s11, %s699_s18  }
  0x3f   : > { %s29_s27 = sadd.s32 1, %s690_s16  ;;  %s41_s19 = sadd.s32 1, %s682_s14 }
  0x40   : > { %p30_p13 = scmp.ge.s32.totalorder %s29_s27, 2  ;;  %p48_p6 = scmp.ne.s32.totalorder %s682_s14, %s678_s13 }
  0x41   : > { %p49_p10 = scmp.eq.s32.totalorder %s694_s17, 0  ;;  %p462_p3 = scmp.lt.s32.totalorder %s694_s17, 2 }
  0x42   : > { %s1027_s27 = smov (%p30_p13, %s29_s27), 0  ;;  %p865_p7 = por %p764_p2, %p48_p6 }
  0x43   : > { %p50_p5 = por %p49_p10, %p48_p6  ;;  %s36_s28 = ssub.s32 %s690_s16, %s1027_s27 }
  0x44   : > { %s1012_s25 = scalar_select %p865_p7, 1, 0 }
  0x45   : > { %s190_s30 = sand.u32 1, %s682_s14   ;;  %p39_p9 = scmp.eq.s32.totalorder %s36_s28, 0 }
  0x46   : > { %s418_s29 = sshll.u32 %s190_s30, 4  ;;  %s431_s4 = sshll.u32 %s690_s16, 8 }
  0x47   : > { %s874_s5 = scalar_select %p39_p9, %s682_s14, %s41_s19  }
  0x48   : > { %s879_s8 = scalar_lea.hbm %s998_s0, %s431_s4  ;;  %s194_s21 = scalar_lea.vmem [#allocation2], %s418_s29 }
  0x49   : > { %s203_s26 = sshll.u32 %s194_s21, 4  ;;  %p883_p2 = pnand %p462_p3, %p50_p5  ;;  %s887_s26 = int_to_ptr.vmem [resolvable:$true] %s203_s26 }
  0x4a   : > { %s889_s10 = scalar_lea.sflag [#allocation3], %s190_s30  ;;  %s578_s19 = scalar_lea.hbm %s879_s8, 256 }
  0x4b   : > { %p579_p11 = scmp.ne.s32.totalorder %s879_s8, %s578_s19  ;;  %p580_p12 = pneg %p883_p2 }
  0x4c   : > { %s583_s4 = scalar_lea.hbm %s998_s0, 512  ;;  %p584_p4 = scmp.lt.u32.totalorder %s879_s8, %s998_s0 }
  0x4d   : > { %p581_p0 = pnand %p580_p12, %p579_p11  ;;  %p585_p13 = scmp.lt.u32.totalorder %s583_s4, %s578_s19 }
  0x4e   : > { %p587_p10 = scmp.lt.u32.totalorder %s578_s19, %s879_s8 }
  0x4f   : > { %p582_p1 = pneg %p581_p0  ;;  %p586_p6 = por %p585_p13, %p584_p4 }
  0x51   : > { %p588_p3 = por %p587_p10, %p586_p6 }
  0x53   : > { %p589_p5 = pnand %p588_p3, %p582_p1 }
  0x55   : > { %592 = shalt.err (!%p589_p5)
}
  0x56   : > { %s593_s30 = scalar_lea.vmem %s887_s26, 256  ;;  %s700_s21 = smov [#allocation2]  }
  0x57   : > { %p594_p9 = scmp.ne.s32.totalorder %s887_s26, %s593_s30  ;;  %s598_s28 = sshll.u32 %s700_s21, 4  ;;  %s599_s28 = int_to_ptr.vmem [resolvable:$false] %s598_s28 }
  0x58   : > { %s600_s29 = scalar_lea.vmem %s599_s28, 512  ;;  %p601_p7 = scmp.lt.s32.totalorder %s887_s26, %s599_s28 }
  0x59   : > { %p596_p11 = pnand %p594_p9, %p580_p12  ;;  %p602_p4 = scmp.lt.s32.totalorder %s600_s29, %s593_s30 }
  0x5b   : > { %p597_p0 = pneg %p596_p11  ;;  %p603_p13 = por %p602_p4, %p601_p7 }
  0x5d   : > { %p604_p6 = pnand %p603_p13, %p597_p0 }
  0x5f   : > { %607 = shalt.err (!%p604_p6)
}
  0x60   : > { %455 = dma.hbm_to_vmem [thread:$0]  (!%p883_p2), %s879_s8, 256, %s887_s26, %s889_s10, %s698_s11, %s698_s11, %s699_s18  }
  0x61   : > { %215 = sbr.rel (%p780_p8) target bundleno = 248 (0xf8), region = 32  ;;  %s923_s19 = sand.u32 (!%p780_p8), 1, %s678_s13  }
  0x62   : > { %s422_s4 = sshll.u32 (!%p780_p8), %s923_s19, 4  ;;  %s218_s6 = scalar_lea.sflag (!%p780_p8), [#allocation3], %s923_s19 }
  0x63   : > { %s221_s7 = scalar_lea.vmem (!%p780_p8), [#allocation2], %s422_s4  ;;  %p1014_p7 = scmp.ne.s32.totalorder (!%p780_p8), %s1008_s22, 0 }
  0x68   : > { %661 = dma.done.wait (%p1014_p7), %s218_s6, 256  }
  0x69   : > { %663 = vsyncadd (%p1014_p7), %s218_s6, 4294967040  ;;  %p1015_p12 = scmp.ne.s32.totalorder %s1006_s20, 0 }
  0x6b   : > { %665 = dma.done.wait (%p1015_p12), [#allocation6], 512  }
  0x6c   : > { %667 = vsyncadd (%p1015_p12), [#allocation6], 4294966784  ;;  %v256_v0 = vld [vmem:[%s221_s7] sm:$0xff]  ;;  %s701_s24 = smov 1   ;;  %s702_s11 = smov 127   ;;  %v257_v1 = vld [vmem:[%s221_s7 + $0x8] sm:$0xff]  ;;  %v270_v2 = vlaneseq }
  0x6d   : > { %266 = vrot.lane.b32.xlu1 %v256_v0, %s701_s24  ;;  %262 = vrot.lane.b32.xlu0 %v256_v0, %s702_s11  ;;  %v258_v5 = vld [vmem:[#allocation5] sm:$0xff]  ;;  %v260_v7 = vld [vmem:[#allocation7] sm:$0xff]  ;;  %v259_v11 = vld [vmem:[#allocation5 + $0x8] sm:$0xff]  ;;  %s251_s20 = scalar_lea.vmem [#allocation8], %s422_s4  ;;  %s432_s18 = sshll.u32 %s686_s15, 8 }
  0x6e   : > { %v271_v3 = vand.u32 127, %v270_v2  ;;  %v278_v8 = vmul.f32 %v258_v5, %v256_v0  ;;  %s302_s22 = sshll.u32 %s251_s20, 4  ;;  %v261_v14 = vld [vmem:[#allocation7 + $0x8] sm:$0xff]  ;;  %v279_v15 = vmul.f32 %v259_v11, %v257_v1  ;;  %s949_s9 = scalar_lea.hbm %s1001_s3, %s432_s18  ;;  %s944_s22 = int_to_ptr.vmem [resolvable:$true] %s302_s22 }
  0x6f   : > { %s287_s10 = scalar_lea.sflag [#allocation4], %s923_s19  ;;  %s608_s30 = scalar_lea.vmem %s944_s22, 256 }
  0x70   : > { %v272_v4 = vand.u32 1, %v271_v3  ;;  %p609_p8 = scmp.ne.s32.totalorder %s944_s22, %s608_s30  ;;  %p1018_p2 = scmp.ne.s32.totalorder %s1012_s25, 0 }
  0x71   : > { %268 = vrot.lane.b32.xlu1 %v257_v1, %s701_s24  ;;  %264 = vrot.lane.b32.xlu0 %v257_v1, %s702_s11  ;;  %s703_s15 = smov [#allocation8]  }
  0x72   : > { %vm935_vm0 = vcmp.eq.s32.totalorder %v272_v4, 0  ;;  %p610_p1 = pnand %p609_p8, %p1018_p2  ;;  %s612_s21 = sshll.u32 %s703_s15, 4  ;;  %s613_s21 = int_to_ptr.vmem [resolvable:$false] %s612_s21 }
  0x73   : > { %s614_s28 = scalar_lea.vmem %s613_s21, 512  ;;  %p615_p3 = scmp.lt.s32.totalorder %s944_s22, %s613_s21 }
  0x74   : > { %p611_p10 = pneg %p610_p1  ;;  %p616_p5 = scmp.lt.s32.totalorder %s614_s28, %s608_s30 }
  0x76   : > { %p617_p9 = por %p616_p5, %p615_p3 }
  0x78   : > { %p618_p11 = pnand %p617_p9, %p611_p10 }
  0xdf   : > { %v267_v9 = vpop.permute.xlu1 %266  ;;  %v263_v10 = vpop.permute.xlu0 %262 }
  0xe0   : > { %v276_v12 = vsel %vm935_vm0, %v263_v10, %v267_v9 }
  0xe1   : > { %v280_v13 = vmul.f32 %v276_v12, %v260_v7 }
  0xe3   : > { %v282_v16 = vadd.f32 %v280_v13, %v278_v8  ;;  %v269_v17 = vpop.permute.xlu1 %268  ;;  %v265_v18 = vpop.permute.xlu0 %264 }
  0xe4   : > { %v277_v19 = vsel %vm935_vm0, %v265_v18, %v269_v17 }
  0xe5   : > { %284 = vst [vmem:[%s251_s20] sm:$0xff] %v282_v16  ;;  %v281_v20 = vmul.f32 %v277_v19, %v261_v14 }
  0xe7   : > { %v283_v21 = vadd.f32 %v281_v20, %v279_v15 }
  0xe9   : > { %285 = vst [vmem:[%s251_s20 + $0x8] sm:$0xff] %v283_v21 }
  0xea   : > { %621 = shalt.err (!%p618_p11)
}
  0xeb   : > { %s622_s29 = scalar_lea.hbm %s949_s9, 256  ;;  %s626_s7 = scalar_lea.hbm %s1001_s3, 512 }
  0xec   : > { %p623_p0 = scmp.ne.s32.totalorder %s949_s9, %s622_s29  ;;  %p627_p6 = scmp.lt.u32.totalorder %s949_s9, %s1001_s3 }
  0xed   : > { %p628_p7 = scmp.lt.u32.totalorder %s626_s7, %s622_s29  ;;  %p630_p8 = scmp.lt.u32.totalorder %s622_s29, %s949_s9 }
  0xee   : > { %p624_p4 = pnand %p623_p0, %p1018_p2 }
  0xef   : > { %p629_p12 = por %p628_p7, %p627_p6 }
  0xf0   : > { %p625_p13 = pneg %p624_p4 }
  0xf1   : > { %p631_p1 = por %p630_p8, %p629_p12 }
  0xf3   : > { %p632_p10 = pnand %p631_p1, %p625_p13 }
  0xf5   : > { %635 = shalt.err (!%p632_p10)
}
  0xf6   : > { %s704_s20 = smov 128   ;;  %s705_s18 = smov 8  }
  0xf7   : > { %443 = dma.vmem_to_hbm [thread:$0]  (%p1018_p2), %s944_s22, 256, %s949_s9, %s287_s10, %s704_s20, %s704_s20, %s705_s18  }
  0xf8 PF: > { %s317_s8 = sand.u32 1, %s674_s12   ;;  %p1019_p3 = scmp.ne.s32.totalorder %s1009_s23, 0 }
  0xf9   : > { %p1020_p5 = scmp.ge.s32.totalorder %s694_s17, 2  ;;  %s318_s26 = scalar_lea.sflag [#allocation4], %s317_s8 }
  0xfb   : > { %p457_p9 = pnand %p1020_p5, %p1019_p3 }
  0xfd   : > { %669 = dma.done.wait (!%p457_p9), %s318_s26, 256  }
  0xfe   : > { %671 = vsyncadd (!%p457_p9), %s318_s26, 4294967040  ;;  %s20_s17 = sadd.s32 1, %s694_s17   ;;  %s1021_s12 = smov %s678_s13 }
  0xff   : > { %p17_p11 = scmp.ge.s32.totalorder %s20_s17, 4   ;;  %s1022_s13 = smov %s682_s14 }
 0x100   : > { %s1023_s14 = smov %s874_s5  ;;  %s1024_s15 = smov %s690_s16 }
 0x101   : > { %s1025_s16 = smov %s1027_s27  ;;  %19 = sbr.rel (!%p17_p11) target bundleno = 7 (0x7), region = 87 }
 0x108   :  { %323 = vsyncpa [#allocation3], 1 }
 0x109   :  { %325 = vsyncpa [#allocation3 + $0x1], 1 }
 0x10a   :  { %326 = vsyncpa [#allocation6], 1 }
 0x10b   :  { %327 = vsyncpa [#allocation4], 1 }
 0x10c   :  { %329 = vsyncpa [#allocation4 + $0x1], 1 }

</bundles_post_ra>
